<compile_context>
chip_gen: v5e
topology: v5e:2x2
jax: 0.10.0
libtpu: 0.0.40
codegen_flags: <defaults>
</compile_context>

<pallas_src>
import math
import jax
import jax.numpy as jnp
from jax.experimental import pallas as pl
from jax.experimental.pallas import tpu as pltpu


def _pick_tile(total, target, quantum):
    """Largest multiple of `quantum` that divides `total` and is <= target; else full dim."""
    if total <= target or total % quantum != 0:
        return total
    best = quantum
    for t in range(quantum, target + 1, quantum):
        if total % t == 0:
            best = t
    return best


def make_modulated_conv2d(in_channel, out_channel, kernel_size, style_dim,
                          demodulate=True, eps=1e-8):
    """Returns (params, forward_fn) mirroring ModulatedConv2d(upsample=False)."""
    k = kernel_size
    pad = k // 2
    conv_scale = 1.0 / math.sqrt(in_channel * k * k)
    mod_scale = 1.0 / math.sqrt(style_dim)  # EqualLinear scale, lr_mul=1

    key = jax.random.PRNGKey(0)
    k1, k2 = jax.random.split(key)
    params = {
        # ModulatedConv2d.weight: (1, out, in, k, k) -> stored as (out, in, k, k)
        "weight": jax.random.normal(k1, (out_channel, in_channel, k, k), jnp.float32),
        # EqualLinear(style_dim, in_channel, bias_init=1)
        "mod_weight": jax.random.normal(k2, (in_channel, style_dim), jnp.float32),
        "mod_bias": jnp.ones((in_channel,), jnp.float32),
    }

    def _kernel(p_ref, w_ref, d_ref, o_ref):
        # p_ref: (1, K, tile_hw)        bf16  im2col patches of the style-modulated input
        # w_ref: (tile_co, K)           bf16  shared (unmodulated, conv_scale-folded) weight
        # d_ref: (1, 1, tile_co)        f32   per-sample demodulation coefficients
        # o_ref: (1, tile_co, tile_hw)  f32
        acc = jnp.dot(w_ref[...], p_ref[0],
                      preferred_element_type=jnp.float32)        # single MXU matmul
        o_ref[0] = (acc * d_ref[0, 0, :][:, None]).astype(o_ref.dtype)

    @jax.jit
    def forward(params, x, style):
        # x: (B, C_in, H, W) f32, style: (B, style_dim) f32
        B, C_in, H, W = x.shape
        assert C_in == in_channel
        HW = H * W
        K = C_in * k * k

        # ---- EqualLinear modulation + fused-modconv demod coefficient (tiny; XLA glue) ----
        s = style @ (params["mod_weight"] * mod_scale).T + params["mod_bias"]   # (B, C_in)
        if demodulate:
            wsq = jnp.sum(jnp.square(conv_scale * params["weight"]), axis=(2, 3))  # (C_out, C_in)
            d = jax.lax.rsqrt(jnp.square(s) @ wsq.T + eps)                          # (B, C_out)
        else:
            d = jnp.ones((B, out_channel), jnp.float32)
        d = d.reshape(B, 1, out_channel).astype(jnp.float32)

        # ---- modulate the input, pad, im2col to a lane-dense (B, C_in*k*k, H*W) slab ----
        x_mod = x * s[:, :, None, None]
        x_pad = jnp.pad(x_mod, ((0, 0), (0, 0), (pad, pad), (pad, pad)))
        patches = jnp.stack(
            [x_pad[:, :, kh:kh + H, kw:kw + W] for kh in range(k) for kw in range(k)],
            axis=2,                                   # K-axis order = (c_in, kh, kw)
        ).reshape(B, K, HW)

        # shared weight, conv_scale folded in, flattened OIHW -> (C_out, C_in*k*k)
        w_mat = (conv_scale * params["weight"]).reshape(out_channel, K)

        # bf16 MXU operands, f32 accumulate / demod / output
        patches = patches.astype(jnp.bfloat16)
        w_mat = w_mat.astype(jnp.bfloat16)

        # ---- tiling: lane-dense spatial tiles, C_out tiles; sized for v7x's smaller VMEM ----
        tile_hw = _pick_tile(HW, 1024, 128)
        tile_co = _pick_tile(out_channel, 256, 128)
        n_co = out_channel // tile_co
        n_hw = HW // tile_hw

        # explicit scoped-VMEM budget: double-buffered inputs + double-buffered output
        tile_bytes = (2 * (K * tile_hw * 2)            # patches block (bf16)
                      + 2 * (tile_co * K * 2)          # weight block (bf16)
                      + 2 * (tile_co * 4)              # demod block (f32)
                      + 2 * (tile_co * tile_hw * 4))   # output block (f32)
        vmem_limit = max(32 * 1024 * 1024,
                         min(64 * 1024 * 1024, 2 * tile_bytes + 4 * 1024 * 1024))

        out_flat = pl.pallas_call(
            _kernel,
            out_shape=jax.ShapeDtypeStruct((B, out_channel, HW), jnp.float32),
            grid_spec=pltpu.PrefetchScalarGridSpec(
                num_scalar_prefetch=0,
                grid=(B, n_co, n_hw),
                in_specs=[
                    pl.BlockSpec((1, K, tile_hw), lambda b, co, hw: (b, 0, hw)),
                    pl.BlockSpec((tile_co, K), lambda b, co, hw: (co, 0)),
                    pl.BlockSpec((1, 1, tile_co), lambda b, co, hw: (b, 0, co)),
                ],
                out_specs=pl.BlockSpec((1, tile_co, tile_hw),
                                       lambda b, co, hw: (b, co, hw)),
            ),
            compiler_params=pltpu.CompilerParams(
                dimension_semantics=("parallel", "parallel", "parallel"),
                vmem_limit_bytes=vmem_limit),
        )(patches, w_mat, d)

        # reshape back to NCHW outside the kernel (stores inside stay lane-dense)
        return out_flat.reshape(B, out_channel, H, W)

    return params, forward


def _reference(params, x, style, in_channel, out_channel, kernel_size, style_dim,
               demodulate=True, eps=1e-8):
    """Pure-JAX f32 reference mirroring the PyTorch forward (upsample=False)."""
    k = kernel_size
    pad = k // 2
    conv_scale = 1.0 / math.sqrt(in_channel * k * k)
    mod_scale = 1.0 / math.sqrt(style_dim)
    B = x.shape[0]
    s = style @ (params["mod_weight"] * mod_scale).T + params["mod_bias"]   # (B, C_in)
    w = conv_scale * params["weight"][None] * s[:, None, :, None, None]      # (B,O,I,k,k)
    if demodulate:
        w = w * jax.lax.rsqrt(jnp.sum(w * w, axis=(2, 3, 4), keepdims=True) + eps)
    outs = []
    for b in range(B):
        outs.append(jax.lax.conv_general_dilated(
            x[b:b + 1], w[b],
            window_strides=(1, 1), padding=[(pad, pad), (pad, pad)],
            dimension_numbers=("NCHW", "OIHW", "NCHW")))
    return jnp.concatenate(outs, axis=0)


if __name__ == "__main__":
    B, C_in, C_out, KSIZE, S_DIM, H, W = 2, 4, 8, 3, 32, 16, 16

    params, forward = make_modulated_conv2d(C_in, C_out, KSIZE, S_DIM, demodulate=True)

    key = jax.random.PRNGKey(0)
    kx, ks = jax.random.split(key)
    x = jax.random.normal(kx, (B, C_in, H, W), jnp.float32)
    style = jax.random.normal(ks, (B, S_DIM), jnp.float32)

    out = jax.block_until_ready(forward(params, x, style))

    ref = _reference(params, x, style, C_in, C_out, KSIZE, S_DIM, demodulate=True)
    assert out.shape == (B, C_out, H, W)
    # bf16 MXU operands with f32 accumulate/demod vs a pure-f32 reference -> loose tolerance
    assert jnp.allclose(out, ref, atol=5e-2, rtol=5e-2), "mismatch vs reference"

    print("KERNEL_OK")
</pallas_src>

<mosaic_0001>
module attributes {stable_mosaic.version = 11 : i64} {
  func.func @_kernel(%arg0: i32, %arg1: i32, %arg2: i32, %arg3: memref<1x36x256xbf16, #tpu.memory_space<vmem>>, %arg4: memref<8x36xbf16, #tpu.memory_space<vmem>>, %arg5: memref<1x1x8xf32, #tpu.memory_space<vmem>>, %arg6: memref<1x8x256xf32, #tpu.memory_space<vmem>>) attributes {dimension_semantics = [#tpu.dimension_semantics<parallel>, #tpu.dimension_semantics<parallel>, #tpu.dimension_semantics<parallel>], iteration_bounds = array<i64: 2, 1, 1>, scalar_prefetch = 0 : i64, scratch_operands = 0 : i64, tpu.core_type = #tpu.core_type<tc>, window_params = [{transform_indices = @transform_0, window_bounds = array<i64: 1, 36, 256>}, {transform_indices = @transform_1, window_bounds = array<i64: 8, 36>}, {transform_indices = @transform_2, window_bounds = array<i64: 1, 1, 8>}, {transform_indices = @transform_3, window_bounds = array<i64: 1, 8, 256>}]} {
    %c0 = arith.constant 0 : index
    %c0_0 = arith.constant 0 : index
    %0 = vector.load %arg4[%c0, %c0_0] : memref<8x36xbf16, #tpu.memory_space<vmem>>, vector<8x36xbf16>
    %c0_1 = arith.constant 0 : index
    %c0_2 = arith.constant 0 : index
    %c0_3 = arith.constant 0 : index
    %1 = vector.load %arg3[%c0_1, %c0_2, %c0_3] : memref<1x36x256xbf16, #tpu.memory_space<vmem>>, vector<1x36x256xbf16>
    %2 = vector.shape_cast %1 : vector<1x36x256xbf16> to vector<36x256xbf16>
    %cst = arith.constant dense<0.000000e+00> : vector<8x256xf32>
    %3 = tpu.matmul %0, %2, %cst {dimension_numbers = #tpu.dot_dimension_numbers<[1], [0], [0], [1], [0, 0, 1, 1], [], []>} : vector<8x36xbf16>, vector<36x256xbf16>, vector<8x256xf32> -> vector<8x256xf32>
    %c0_4 = arith.constant 0 : index
    %c0_5 = arith.constant 0 : index
    %c0_6 = arith.constant 0 : index
    %4 = vector.load %arg5[%c0_4, %c0_5, %c0_6] : memref<1x1x8xf32, #tpu.memory_space<vmem>>, vector<1x1x8xf32>
    %5 = vector.shape_cast %4 : vector<1x1x8xf32> to vector<8xf32>
    %6 = vector.shape_cast %5 : vector<8xf32> to vector<8x1xf32>
    %7 = vector.broadcast %6 : vector<8x1xf32> to vector<8x256xf32>
    %8 = arith.mulf %3, %7 : vector<8x256xf32>
    %c0_7 = arith.constant 0 : index
    %c0_8 = arith.constant 0 : index
    %c0_9 = arith.constant 0 : index
    %9 = vector.load %arg6[%c0_7, %c0_8, %c0_9] : memref<1x8x256xf32, #tpu.memory_space<vmem>>, vector<1x8x256xf32>
    %10 = vector.shape_cast %9 : vector<1x8x256xf32> to vector<8x256xf32>
    %11 = vector.shape_cast %8 : vector<8x256xf32> to vector<1x8x256xf32>
    tpu.vector_store %arg6[%c0_7, %c0_8, %c0_9], %11 {strides = array<i32>} : memref<1x8x256xf32, #tpu.memory_space<vmem>>, vector<1x8x256xf32>,
    return
  }
  func.func @transform_0(%arg0: i32, %arg1: i32, %arg2: i32) -> (i32, i32, i32) {
    %c0_i32 = arith.constant 0 : i32
    %c0_i32_0 = arith.constant 0 : i32
    return %arg0, %c0_i32, %arg2 : i32, i32, i32
  }
  func.func @transform_1(%arg0: i32, %arg1: i32, %arg2: i32) -> (i32, i32) {
    %c0_i32 = arith.constant 0 : i32
    %c0_i32_0 = arith.constant 0 : i32
    return %arg1, %c0_i32 : i32, i32
  }
  func.func @transform_2(%arg0: i32, %arg1: i32, %arg2: i32) -> (i32, i32, i32) {
    %c0_i32 = arith.constant 0 : i32
    %c0_i32_0 = arith.constant 0 : i32
    return %arg0, %c0_i32, %arg1 : i32, i32, i32
  }
  func.func @transform_3(%arg0: i32, %arg1: i32, %arg2: i32) -> (i32, i32, i32) {
    %c0_i32 = arith.constant 0 : i32
    return %arg0, %arg1, %arg2 : i32, i32, i32
  }
}

</mosaic_0001>

<bundles_post_ra>
// kernel: forward.1
= control target key start
LH: loop header
LB: loop body
LE: loop exit
PB: predicated region body
PF: predicated region fallthrough
CT: control target
= control target key end

     0   :  { %s588_s12 = smov 0   ;;  %s590_s13 = smov 0   ;;  %s632_s0 = inlined_call_operand.vmem [shape: bf16[2,36,256], index: 0, kind: input, shape index: {}]   ;;  %s633_s1 = inlined_call_operand.vmem [shape: bf16[8,36], index: 1, kind: input, shape index: {}]   ;;  %s634_s2 = inlined_call_operand.vmem [shape: f32[2,1,8], index: 2, kind: input, shape index: {}]   ;;  %s635_s3 = inlined_call_operand.vmem [shape: f32[2,8,256], index: 3, kind: output, shape index: {}]  }
   0x1   :  { %s592_s14 = smov 0  }
   0x2 LB: > { %s32_s15 = sadd.s32 1, %s562_s13  ;;  %p488_p0 = scmp.ge.s32.totalorder %s566_s14, 1  ;;  %s566_s14 = sphi %s592_s14, %s13_s14   ;;  %s562_s13 = sphi %s590_s13, %s637_s13   ;;  %s558_s12 = sphi %s588_s12, %s636_s12  }
   0x3   : > { %p34_p1 = scmp.ge.s32.totalorder %s32_s15, 2  ;;  %p189_p2 = scmp.lt.s32.totalorder %s566_s14, 3 }
   0x5   : > { %s639_s15 = smov (%p34_p1, %s32_s15), 0  ;;  %p190_p3 = pnand %p488_p0, %p189_p2 }
   0x6   : > { %p236_p4 = scmp.lt.s32.totalorder (!%p190_p3), %s558_s12, 1 }
   0x7   : > { %193 = sbr.rel (%p190_p3) target bundleno = 167 (0xa7), region = 32 }
   0xc   : > { %v340_v0 = vlaneseq  ;;  %s641_s12 = smov (!%p236_p4, %s558_s12), 1  ;;  %vm305_vm0 = vcmask 1041408   ;;  %v270_v22 = vld [vmem:[%s633_s1] sm:$0xf]  ;;  %vm301_vm1 = vcmask 293888  }
   0xd   : > { %s517_s16 = smul.u32 40, %s641_s12  ;;  %s254_s19 = scalar_lea.vmem %s634_s2, %s641_s12 }
   0xe   : > { %v341_v1 = vshrl.u32 %v340_v0, 7  ;;  %v543_v5 = vld [vmem:[%s254_s19] ss:$0 sm:$0xff]  ;;  %s512_s25 = sshll.u32 %s641_s12, 4 }
   0xf   : > { %s243_s22 = scalar_lea.vmem %s632_s0, %s517_s16  ;;  %s267_s28 = scalar_lea.vmem %s635_s3, %s512_s25 }
  0x10   : > { %542 = vset.pattern.permute.xlu0 %v341_v1  ;;  %v275_v2 = vld [vmem:[%s243_s22 + $0x20] sm:$0x33]  ;;  %v502_v6 = vld [vmem:[%s243_s22 + $0x10] sm:$0xf]  ;;  %v516_v9 = vld [vmem:[%s243_s22 + $0x14] sm:$0xf0] }
  0x11   : > { %v289_v3 = vunpack.c.l.b16 %v275_v2  ;;  %v290_v4 = vunpack.c.h.b16 %v275_v2  ;;  %v515_v10 = vld [vmem:[%s243_s22 + $0x14] sm:$0xf]  ;;  %v504_v11 = vld [vmem:[%s243_s22 + $0x18] sm:$0xf0]  ;;  %v503_v14 = vor.u32 %v516_v9, %v502_v6  ;;  %v494_v16 = vld [vmem:[%s243_s22] sm:$0xf] }
  0x12   : > { %v507_v15 = vor.u32 %v515_v10, %v504_v11  ;;  %v514_v17 = vld [vmem:[%s243_s22 + $0x4] sm:$0xf0]  ;;  %v513_v18 = vld [vmem:[%s243_s22 + $0x4] sm:$0xf]  ;;  %v496_v19 = vld [vmem:[%s243_s22 + $0x8] sm:$0xf0] }
  0x13   : > { %v295_v7 = vpack.c.b16 %v289_v3, %v289_v3  ;;  %v296_v8 = vpack.c.b16 %v290_v4, %v290_v4  ;;  %v495_v20 = vor.u32 %v514_v17, %v494_v16  ;;  %v499_v21 = vor.u32 %v513_v18, %v496_v19 }
  0x15   : > { %v307_v12 = vsel %vm305_vm0, %v295_v7, 0  ;;  %v310_v13 = vsel %vm305_vm0, %v296_v8, 0 }
  0x16   : > { %317 = vmatpush.bf16.msra.mxu0 %v307_v12  ;;  %330 = vmatpush.bf16.msra.mxu1 %v310_v13 }
  0x18   : > { %344 = vperm.xlu0 %542, %v543_v5  }
  0x1a   : > { %318 = vmatpush.bf16.msra.mxu0 %v503_v14  ;;  %331 = vmatpush.bf16.msra.mxu1 %v507_v15 }
  0x1e   : > { %319 = vmatpush.bf16.msra.mxu0 %v495_v20  ;;  %332 = vmatpush.bf16.msra.mxu1 %v499_v21 }
  0x21   : > { %508 = vmatmul.msk.bf16.vlgmr.msra.gmra.mxu0 %vm301_vm1, %v270_v22  ;;  %509 = vmatmul.msk.bf16.vlgmr.msra.gmra.mxu1 %vm301_vm1, %v270_v22 }
  0x8a   : > { %v345_v23 = vpop.permute.xlu0 %344 }
  0x9e   : > { %v321_v24 = vpop.f32.mrf.mxu0  ;;  %v334_v25 = vpop.f32.mrf.mxu1 }
  0x9f   : > { %v346_v26 = vmul.f32 %v345_v23, %v321_v24  ;;  %v347_v27 = vmul.f32 %v345_v23, %v334_v25 }
  0xa1   : > { %348 = vst [vmem:[%s267_s28] sm:$0xff] %v346_v26 }
  0xa2   : > { %349 = vst [vmem:[%s267_s28 + $0x8] sm:$0xff] %v347_v27 }
  0xa6   : > { %v323_v28 = vpop.f32.mrf.mxu0  ;;  %v336_v29 = vpop.f32.mrf.mxu1 }
  0xa7 PF: > { %s13_s14 = sadd.s32 1, %s566_s14   ;;  %s636_s12 = smov %s562_s13 }
  0xa8   : > { %p10_p5 = scmp.ge.s32.totalorder %s13_s14, 4   ;;  %s637_s13 = smov %s639_s15 }
  0xaa   :  { %12 = sbr.rel (!%p10_p5) target bundleno = 2 (0x2), region = 68 }

</bundles_post_ra>
